<compile_context>
chip_gen: v5e
topology: v5e:2x2
jax: 0.10.0
libtpu: 0.0.40
codegen_flags: <defaults>
</compile_context>

<pallas_src>
import jax
import jax.numpy as jnp
from jax.experimental import pallas as pl
from jax.experimental.pallas import tpu as pltpu


SUBLANE = 8  # f32 sublane height: batch-tile rows must be a multiple of 8


def _round_up(n: int, m: int) -> int:
    return ((n + m - 1) // m) * m


def _cdiv(a: int, b: int) -> int:
    return (a + b - 1) // b


def four_layer_nn_kernel(x_ref, w1_ref, b1_ref, w2_ref, b2_ref, w3_ref, b3_ref, o_ref):
    """Fused fc1 -> tanh -> fc2 -> tanh -> fc3 for one batch tile.

    All operands are f32 (parity with the PyTorch module). Matmuls run on the
    MXU with f32 accumulation at HIGHEST precision; bias add and tanh run in
    f32 on the VPU/EUP (cheap path on all of v5e/v6e/v7x).
    """
    hi = jax.lax.Precision.HIGHEST
    x = x_ref[...]                                                    # [tm, d_in]
    h1 = jnp.tanh(jnp.dot(x, w1_ref[...], precision=hi,
                          preferred_element_type=jnp.float32) + b1_ref[...])
    h2 = jnp.tanh(jnp.dot(h1, w2_ref[...], precision=hi,
                          preferred_element_type=jnp.float32) + b2_ref[...])
    o = jnp.dot(h2, w3_ref[...], precision=hi,
                preferred_element_type=jnp.float32) + b3_ref[...]
    o_ref[...] = o.astype(o_ref.dtype)                                # [tm, d_out]


def _choose_tile(batch: int, tile_m: int, min_tiles: int = 2):
    """Pick a batch tile: multiple of 8, bounded overshoot (<8 rows/tile),
    and >=2 grid tiles once the batch is large enough (v7x dual-TensorCore)."""
    if batch <= SUBLANE * min_tiles:
        n_tiles = 1
    else:
        n_tiles = max(_cdiv(batch, tile_m), min_tiles)
    tm = _round_up(_cdiv(batch, n_tiles), SUBLANE)
    grid = _cdiv(batch, tm)
    return tm, grid


def four_layer_nn(x, params, *, tile_m=1024):
    """Pallas forward pass. x: [B, d_in] f32, params as produced by init_params.

    Returns [B, d_out] f32. No wrapper-side padding / casting / slicing.
    """
    w1, b1, w2, b2, w3, b3 = params
    batch, d_in = x.shape
    hidden = w1.shape[1]
    d_out = w3.shape[1]

    tm, grid = _choose_tile(batch, tile_m)

    def resident(shape):
        # Same block every grid step -> stays resident in VMEM.
        return pl.BlockSpec(shape, lambda i: (0, 0))

    return pl.pallas_call(
        four_layer_nn_kernel,
        out_shape=jax.ShapeDtypeStruct((batch, d_out), x.dtype),
        grid=(grid,),
        in_specs=[
            pl.BlockSpec((tm, d_in), lambda i: (i, 0)),   # x streams over the batch
            resident((d_in, hidden)),                      # W1
            resident((1, hidden)),                         # b1
            resident((hidden, hidden)),                    # W2
            resident((1, hidden)),                         # b2
            resident((hidden, d_out)),                     # W3
            resident((1, d_out)),                          # b3
        ],
        out_specs=pl.BlockSpec((tm, d_out), lambda i: (i, 0)),
        compiler_params=pltpu.CompilerParams(
            dimension_semantics=("parallel",),  # batch tiles split across TCs on v7x
        ),
    )(x, w1, b1, w2, b2, w3, b3)


def init_params(key, input_size, hidden_size, output_size):
    """Deterministic parameter init (Kaiming-uniform-like, as torch.nn.Linear).

    Weights are stored [in, out] (transpose of torch's [out, in]) so the kernel
    computes x @ W + b directly.
    """
    ks = jax.random.split(key, 6)

    def linear(kw, kb, fan_in, fan_out):
        bound = 1.0 / jnp.sqrt(fan_in)
        w = jax.random.uniform(kw, (fan_in, fan_out), jnp.float32, -bound, bound)
        b = jax.random.uniform(kb, (1, fan_out), jnp.float32, -bound, bound)
        return w, b

    w1, b1 = linear(ks[0], ks[1], input_size, hidden_size)
    w2, b2 = linear(ks[2], ks[3], hidden_size, hidden_size)
    w3, b3 = linear(ks[4], ks[5], hidden_size, output_size)
    return w1, b1, w2, b2, w3, b3


def reference_forward(x, params):
    """Pure-f32 reference of the PyTorch forward (HIGHEST precision so the
    reference matmuls are not silently bf16 on TPU)."""
    w1, b1, w2, b2, w3, b3 = params
    hi = jax.lax.Precision.HIGHEST
    h1 = jnp.tanh(jnp.dot(x, w1, precision=hi) + b1)
    h2 = jnp.tanh(jnp.dot(h1, w2, precision=hi) + b2)
    return jnp.dot(h2, w3, precision=hi) + b3


if __name__ == "__main__":
    key = jax.random.PRNGKey(0)
    k_x, k_x2, k_p = jax.random.split(key, 3)

    input_size, hidden_size, output_size = 16, 32, 4
    params = init_params(k_p, input_size, hidden_size, output_size)

    # Small canonical case: single tile.
    batch = 8
    x = jax.random.normal(k_x, (batch, input_size), dtype=jnp.float32)
    out = jax.block_until_ready(four_layer_nn(x, params))
    assert out.shape == (batch, output_size)
    ref = reference_forward(x, params)
    assert jnp.allclose(out, ref, atol=1e-4, rtol=1e-4), float(jnp.max(jnp.abs(out - ref)))

    # Uneven multi-tile case: exercises the >=2-tile (dual-TC) path and the
    # masked writeback of the padded last block.
    batch2 = 24  # -> tm=16, grid=2, last tile covers rows 16..31 (8 masked)
    x2 = jax.random.normal(k_x2, (batch2, input_size), dtype=jnp.float32)
    out2 = jax.block_until_ready(four_layer_nn(x2, params))
    assert out2.shape == (batch2, output_size)
    ref2 = reference_forward(x2, params)
    assert jnp.allclose(out2, ref2, atol=1e-4, rtol=1e-4), float(jnp.max(jnp.abs(out2 - ref2)))

    print("KERNEL_OK")
</pallas_src>

<mosaic_0001>
module attributes {stable_mosaic.version = 11 : i64} {
  func.func @four_layer_nn_kernel(%arg0: i32, %arg1: memref<8x16xf32, #tpu.memory_space<vmem>>, %arg2: memref<16x32xf32, #tpu.memory_space<vmem>>, %arg3: memref<1x32xf32, #tpu.memory_space<vmem>>, %arg4: memref<32x32xf32, #tpu.memory_space<vmem>>, %arg5: memref<1x32xf32, #tpu.memory_space<vmem>>, %arg6: memref<32x4xf32, #tpu.memory_space<vmem>>, %arg7: memref<1x4xf32, #tpu.memory_space<vmem>>, %arg8: memref<8x4xf32, #tpu.memory_space<vmem>>) attributes {dimension_semantics = [#tpu.dimension_semantics<parallel>], iteration_bounds = array<i64: 1>, scalar_prefetch = 0 : i64, scratch_operands = 0 : i64, tpu.core_type = #tpu.core_type<tc>, window_params = [{transform_indices = @transform_0, window_bounds = array<i64: 8, 16>}, {pipeline_mode = #tpu.pipeline_mode<synchronous>, transform_indices = @transform_1, window_bounds = array<i64: 16, 32>}, {pipeline_mode = #tpu.pipeline_mode<synchronous>, transform_indices = @transform_2, window_bounds = array<i64: 1, 32>}, {pipeline_mode = #tpu.pipeline_mode<synchronous>, transform_indices = @transform_3, window_bounds = array<i64: 32, 32>}, {pipeline_mode = #tpu.pipeline_mode<synchronous>, transform_indices = @transform_4, window_bounds = array<i64: 1, 32>}, {pipeline_mode = #tpu.pipeline_mode<synchronous>, transform_indices = @transform_5, window_bounds = array<i64: 32, 4>}, {pipeline_mode = #tpu.pipeline_mode<synchronous>, transform_indices = @transform_6, window_bounds = array<i64: 1, 4>}, {transform_indices = @transform_7, window_bounds = array<i64: 8, 4>}]} {
    %c0 = arith.constant 0 : index
    %c0_0 = arith.constant 0 : index
    %0 = vector.load %arg1[%c0, %c0_0] : memref<8x16xf32, #tpu.memory_space<vmem>>, vector<8x16xf32>
    %c0_1 = arith.constant 0 : index
    %c0_2 = arith.constant 0 : index
    %1 = vector.load %arg2[%c0_1, %c0_2] : memref<16x32xf32, #tpu.memory_space<vmem>>, vector<16x32xf32>
    %cst = arith.constant dense<0.000000e+00> : vector<8x32xf32>
    %2 = tpu.matmul %0, %1, %cst {dimension_numbers = #tpu.dot_dimension_numbers<[1], [0], [0], [1], [0, 0, 1, 1], [], []>, precision = #tpu.contract_precision<fp32>} : vector<8x16xf32>, vector<16x32xf32>, vector<8x32xf32> -> vector<8x32xf32>
    %c0_3 = arith.constant 0 : index
    %c0_4 = arith.constant 0 : index
    %3 = vector.load %arg3[%c0_3, %c0_4] : memref<1x32xf32, #tpu.memory_space<vmem>>, vector<1x32xf32>
    %4 = vector.broadcast %3 : vector<1x32xf32> to vector<8x32xf32>
    %5 = arith.addf %2, %4 : vector<8x32xf32>
    %6 = math.tanh %5 : vector<8x32xf32>
    %c0_5 = arith.constant 0 : index
    %c0_6 = arith.constant 0 : index
    %7 = vector.load %arg4[%c0_5, %c0_6] : memref<32x32xf32, #tpu.memory_space<vmem>>, vector<32x32xf32>
    %cst_7 = arith.constant dense<0.000000e+00> : vector<8x32xf32>
    %8 = tpu.matmul %6, %7, %cst_7 {dimension_numbers = #tpu.dot_dimension_numbers<[1], [0], [0], [1], [0, 0, 1, 1], [], []>, precision = #tpu.contract_precision<fp32>} : vector<8x32xf32>, vector<32x32xf32>, vector<8x32xf32> -> vector<8x32xf32>
    %c0_8 = arith.constant 0 : index
    %c0_9 = arith.constant 0 : index
    %9 = vector.load %arg5[%c0_8, %c0_9] : memref<1x32xf32, #tpu.memory_space<vmem>>, vector<1x32xf32>
    %10 = vector.broadcast %9 : vector<1x32xf32> to vector<8x32xf32>
    %11 = arith.addf %8, %10 : vector<8x32xf32>
    %12 = math.tanh %11 : vector<8x32xf32>
    %c0_10 = arith.constant 0 : index
    %c0_11 = arith.constant 0 : index
    %13 = vector.load %arg6[%c0_10, %c0_11] : memref<32x4xf32, #tpu.memory_space<vmem>>, vector<32x4xf32>
    %cst_12 = arith.constant dense<0.000000e+00> : vector<8x4xf32>
    %14 = tpu.matmul %12, %13, %cst_12 {dimension_numbers = #tpu.dot_dimension_numbers<[1], [0], [0], [1], [0, 0, 1, 1], [], []>, precision = #tpu.contract_precision<fp32>} : vector<8x32xf32>, vector<32x4xf32>, vector<8x4xf32> -> vector<8x4xf32>
    %c0_13 = arith.constant 0 : index
    %c0_14 = arith.constant 0 : index
    %15 = vector.load %arg7[%c0_13, %c0_14] : memref<1x4xf32, #tpu.memory_space<vmem>>, vector<1x4xf32>
    %16 = vector.broadcast %15 : vector<1x4xf32> to vector<8x4xf32>
    %17 = arith.addf %14, %16 : vector<8x4xf32>
    %c0_15 = arith.constant 0 : index
    %c0_16 = arith.constant 0 : index
    %18 = vector.load %arg8[%c0_15, %c0_16] : memref<8x4xf32, #tpu.memory_space<vmem>>, vector<8x4xf32>
    tpu.vector_store %arg8[%c0_15, %c0_16], %17 {strides = array<i32>} : memref<8x4xf32, #tpu.memory_space<vmem>>, vector<8x4xf32>,
    return
  }
  func.func @transform_0(%arg0: i32) -> (i32, i32) {
    %c0_i32 = arith.constant 0 : i32
    %c0_i32_0 = arith.constant 0 : i32
    return %arg0, %c0_i32 : i32, i32
  }
  func.func @transform_1(%arg0: i32) -> (i32, i32) {
    %c0_i32 = arith.constant 0 : i32
    %c0_i32_0 = arith.constant 0 : i32
    %c0_i32_1 = arith.constant 0 : i32
    return %c0_i32, %c0_i32_0 : i32, i32
  }
  func.func @transform_2(%arg0: i32) -> (i32, i32) {
    %c0_i32 = arith.constant 0 : i32
    %c0_i32_0 = arith.constant 0 : i32
    %c0_i32_1 = arith.constant 0 : i32
    return %c0_i32, %c0_i32_0 : i32, i32
  }
  func.func @transform_3(%arg0: i32) -> (i32, i32) {
    %c0_i32 = arith.constant 0 : i32
    %c0_i32_0 = arith.constant 0 : i32
    %c0_i32_1 = arith.constant 0 : i32
    return %c0_i32, %c0_i32_0 : i32, i32
  }
  func.func @transform_4(%arg0: i32) -> (i32, i32) {
    %c0_i32 = arith.constant 0 : i32
    %c0_i32_0 = arith.constant 0 : i32
    %c0_i32_1 = arith.constant 0 : i32
    return %c0_i32, %c0_i32_0 : i32, i32
  }
  func.func @transform_5(%arg0: i32) -> (i32, i32) {
    %c0_i32 = arith.constant 0 : i32
    %c0_i32_0 = arith.constant 0 : i32
    %c0_i32_1 = arith.constant 0 : i32
    return %c0_i32, %c0_i32_0 : i32, i32
  }
  func.func @transform_6(%arg0: i32) -> (i32, i32) {
    %c0_i32 = arith.constant 0 : i32
    %c0_i32_0 = arith.constant 0 : i32
    %c0_i32_1 = arith.constant 0 : i32
    return %c0_i32, %c0_i32_0 : i32, i32
  }
  func.func @transform_7(%arg0: i32) -> (i32, i32) {
    %c0_i32 = arith.constant 0 : i32
    %c0_i32_0 = arith.constant 0 : i32
    return %arg0, %c0_i32 : i32, i32
  }
}

</mosaic_0001>

<bundles_post_ra>
// kernel: tpu_custom_call.1
= control target key start
LH: loop header
LB: loop body
LE: loop exit
PB: predicated region body
PF: predicated region fallthrough
CT: control target
= control target key end

     0   :  { %12 = vsyncpa [#allocation3], 0  ;;  %s780_s0 = inlined_call_operand.hbm [shape: f32[8,16], index: 0, kind: input, shape index: {}]   ;;  %s781_s1 = inlined_call_operand.hbm [shape: f32[16,32], index: 1, kind: input, shape index: {}]   ;;  %s782_s2 = inlined_call_operand.vmem [shape: f32[1,32], index: 2, kind: input, shape index: {}]   ;;  %s783_s3 = inlined_call_operand.vmem [shape: f32[32,32], index: 3, kind: input, shape index: {}]   ;;  %s784_s4 = inlined_call_operand.vmem [shape: f32[1,32], index: 4, kind: input, shape index: {}]   ;;  %s785_s5 = inlined_call_operand.vmem [shape: f32[32,4], index: 5, kind: input, shape index: {}]   ;;  %s786_s6 = inlined_call_operand.vmem [shape: f32[1,4], index: 6, kind: input, shape index: {}]   ;;  %s787_s7 = inlined_call_operand.vmem [shape: f32[8,4], index: 7, kind: output, shape index: {}]  }
   0x1   :  { %s19_s26 = sshll.u32 %s780_s0, 4  ;;  %s20_s26 = int_to_ptr.hbm [resolvable:$true] %s19_s26 }
   0x2   :  { %13 = vsyncpa [#allocation5], 0  ;;  %s692_s27 = smov [#allocation2]   ;;  %s29_s8 = sshll.u32 %s781_s1, 4  ;;  %s30_s8 = int_to_ptr.hbm [resolvable:$true] %s29_s8 }
   0x3   :  { %s21_s28 = sshll.u32 %s692_s27, 4  ;;  %s693_s9 = smov [#allocation4]   ;;  %s22_s28 = int_to_ptr.vmem [resolvable:$true] %s21_s28 }
   0x4   :  { %24 = dma.hbm_to_vmem [thread:$0]  %s20_s26, 128, %s22_s28, [#allocation3]  }
   0x5   :  { %s31_s10 = sshll.u32 %s693_s9, 4  ;;  %s694_s11 = smov 128   ;;  %s32_s10 = int_to_ptr.vmem [resolvable:$true] %s31_s10 }
   0x6   :  { %s695_s12 = smov 8  }
   0x7   :  { %37 = dma.hbm_to_vmem [thread:$0]  %s30_s8, 256, %s32_s10, [#allocation5], %s694_s11, %s694_s11, %s695_s12  }
   0x8   :  { %688 = dma.done.wait [#allocation3], 128  }
   0x9   :  { %689 = vsyncadd [#allocation3], 4294967168 }
   0xa   :  { %690 = dma.done.wait [#allocation5], 256  }
   0xb   :  { %691 = vsyncadd [#allocation5], 4294967040  ;;  %vm63_vm0 = vcmask 130048   ;;  %v58_v0 = vld [vmem:[#allocation4 + $0x8] sm:$0xff]  ;;  %v57_v1 = vld [vmem:[#allocation4] sm:$0xff]  ;;  %vm235_vm1 = vcmask 261120  }
   0xc   :  { %v56_v2 = vld [vmem:[#allocation2] sm:$0xff]  ;;  %v81_v3 = vand.u32 4294901760, %v58_v0  ;;  %v83_v4 = vand.u32 4294901760, %v57_v1  ;;  %v230_v19 = vld [vmem:[%s783_s3 + $0x18] sm:$0xff]  ;;  %v229_v21 = vld [vmem:[%s783_s3 + $0x10] sm:$0xff]  ;;  %vm621_vm2 = vcmask 31744  }
   0xd   :  { %v65_v5 = vsel %vm63_vm0, %v56_v2, 0  ;;  %v251_v20 = vand.u32 4294901760, %v230_v19  ;;  %v253_v23 = vand.u32 4294901760, %v229_v21  ;;  %v228_v24 = vld [vmem:[%s783_s3 + $0x8] sm:$0xff]  ;;  %v227_v28 = vld [vmem:[%s783_s3] sm:$0xff]  ;;  %v428_v63 = vld [vmem:[%s785_s5 + $0x18] sm:$0xff] }
   0xe   :  { %v85_v6 = vand.u32 4294901760, %v65_v5  ;;  %v109_v7 = vsub.f32 %v58_v0, %v81_v3  ;;  %82 = vmatpush.msra.mxu0 %v81_v3  ;;  %v115_v8 = vsub.f32 %v57_v1, %v83_v4  ;;  %166 = vmatpush.msra.mxu3 %v81_v3  ;;  %v255_v27 = vand.u32 4294901760, %v228_v24  ;;  %v633_v43 = vld [vmem:[%s782_s2] ss:$0 sm:$0xff]  ;;  %v427_v1 = vld [vmem:[%s785_s5 + $0x10] sm:$0xff] }
   0xf   :  { %v281_v22 = vsub.f32 %v230_v19, %v251_v20  ;;  %v287_v26 = vsub.f32 %v229_v21, %v253_v23  ;;  %v257_v32 = vand.u32 4294901760, %v227_v28  ;;  %v448_v0 = vand.u32 4294901760, %v428_v63 }
  0x10   :  { %v86_v9 = vsub.f32 %v65_v5, %v85_v6  ;;  %141 = vmatpush.msra.mxu2 %v109_v7  ;;  %84 = vmatpush.msra.mxu0 %v83_v4  ;;  %v110_v10 = vand.u32 4294901760, %v109_v7  ;;  %v116_v11 = vand.u32 4294901760, %v115_v8  ;;  %v293_v31 = vsub.f32 %v228_v24, %v255_v27 }
  0x11   :  { %168 = vmatpush.msra.mxu3 %v83_v4  ;;  %v282_v25 = vand.u32 4294901760, %v281_v22  ;;  %v288_v30 = vand.u32 4294901760, %v287_v26  ;;  %v299_v36 = vsub.f32 %v227_v28, %v257_v32  ;;  %v478_v2 = vsub.f32 %v428_v63, %v448_v0 }
  0x12   :  { %v87_v12 = vand.u32 4294901760, %v86_v9  ;;  %144 = vmatpush.msra.mxu2 %v115_v8  ;;  %v111_v13 = vsub.f32 %v109_v7, %v110_v10  ;;  %193 = vmatpush.msrb.mxu0 %v110_v10  ;;  %v117_v14 = vsub.f32 %v115_v8, %v116_v11  ;;  %v294_v35 = vand.u32 4294901760, %v293_v31  ;;  %v425_v8 = vld [vmem:[%s785_s5] sm:$0xff] }
  0x13   :  { %147 = vmatmul.f32.vlgmr.msra.gmra.mxu2 %v86_v9  ;;  %v283_v29 = vsub.f32 %v281_v22, %v282_v25  ;;  %v289_v34 = vsub.f32 %v287_v26, %v288_v30  ;;  %v300_v39 = vand.u32 4294901760, %v299_v36  ;;  %v479_v5 = vand.u32 4294901760, %v478_v2 }
  0x14   :  { %v88_v15 = vsub.f32 %v86_v9, %v87_v12  ;;  %172 = vmatmul.f32.vlgmr.msra.gmra.mxu3 %v87_v12  ;;  %v112_v16 = vand.u32 4294901760, %v111_v13  ;;  %v118_v17 = vand.u32 4294901760, %v117_v14  ;;  %197 = vmatpush.msrb.mxu0 %v116_v11  ;;  %v295_v38 = vsub.f32 %v293_v31, %v294_v35 }
  0x15   :  { %252 = vmatpush.msrb.mxu2 %v251_v20  ;;  %v284_v33 = vand.u32 4294901760, %v283_v29  ;;  %v290_v37 = vand.u32 4294901760, %v289_v34  ;;  %v301_v41 = vsub.f32 %v299_v36, %v300_v39  ;;  %v480_v9 = vsub.f32 %v478_v2, %v479_v5 }
  0x16   :  { %v89_v18 = vand.u32 4294901760, %v88_v15  ;;  %113 = vmatpush.msra.mxu1 %v112_v16  ;;  %v296_v40 = vand.u32 4294901760, %v295_v38  ;;  %v454_v12 = vand.u32 4294901760, %v425_v8 }
  0x17   :  { %254 = vmatpush.msrb.mxu2 %v253_v23  ;;  %285 = vmatpush.msrb.mxu3 %v284_v33  ;;  %v302_v42 = vand.u32 4294901760, %v301_v41  ;;  %v481_v13 = vand.u32 4294901760, %v480_v9 }
  0x18   :  { %90 = vmatmul.f32.vlgmr.msra.gmra.mxu0 %v89_v18  ;;  %119 = vmatpush.msra.mxu1 %v118_v17  ;;  %v496_v16 = vsub.f32 %v425_v8, %v454_v12 }
  0x19   :  { %121 = vmatmul.f32.vlgmr.msra.gmra.mxu1 %v85_v6  ;;  %323 = vmatpush.msra.mxu0 %v281_v22 }
  0x1a   :  { %218 = vmatpush.msrb.mxu1 %v81_v3  ;;  %256 = vmatpush.msrb.mxu2 %v255_v27  ;;  %v450_v3 = vand.u32 4294901760, %v427_v1  ;;  %v497_v19 = vand.u32 4294901760, %v496_v16 }
  0x1b   :  { %326 = vmatpush.msra.mxu0 %v287_v26  ;;  %291 = vmatpush.msrb.mxu3 %v290_v37 }
  0x1c   :  { %220 = vmatpush.msrb.mxu1 %v83_v4  ;;  %258 = vmatpush.msrb.mxu2 %v257_v32  ;;  %v426_v4 = vld [vmem:[%s785_s5 + $0x8] sm:$0xff]  ;;  %v498_v21 = vsub.f32 %v496_v16, %v497_v19 }
  0x1d   :  { %329 = vmatpush.msra.mxu0 %v293_v31  ;;  %297 = vmatpush.msrb.mxu3 %v296_v40  ;;  %v452_v7 = vand.u32 4294901760, %v426_v4 }
  0x1e   :  { %352 = vmatpush.msra.mxu1 %v251_v20  ;;  %381 = vmatpush.msra.mxu2 %v282_v25  ;;  %v499_v22 = vand.u32 4294901760, %v498_v21 }
  0x1f   :  { %332 = vmatpush.msra.mxu0 %v299_v36  ;;  %303 = vmatpush.msrb.mxu3 %v302_v42  ;;  %v490_v11 = vsub.f32 %v426_v4, %v452_v7 }
  0x20   :  { %199 = vmatmul.f32.vlgmr.msrb.gmra.mxu0 %v85_v6  ;;  %354 = vmatpush.msra.mxu1 %v253_v23 }
  0x21   :  { %222 = vmatmul.f32.vlgmr.msrb.gmra.mxu1 %v85_v6  ;;  %385 = vmatpush.msra.mxu2 %v288_v30  ;;  %v484_v6 = vsub.f32 %v427_v1, %v450_v3  ;;  %v491_v15 = vand.u32 4294901760, %v490_v11 }
  0x22   :  { %356 = vmatpush.msra.mxu1 %v255_v27  ;;  %412 = vmatpush.msra.mxu3 %v251_v20 }
  0x23   :  { %389 = vmatpush.msra.mxu2 %v294_v35  ;;  %449 = vmatpush.msrb.mxu0 %v448_v0  ;;  %v485_v10 = vand.u32 4294901760, %v484_v6  ;;  %v492_v18 = vsub.f32 %v490_v11, %v491_v15 }
  0x24   :  { %358 = vmatpush.msra.mxu1 %v257_v32  ;;  %414 = vmatpush.msra.mxu3 %v253_v23  ;;  %v634_v23 = vld [vmem:[%s784_s4] ss:$0 sm:$0xff] }
  0x25   :  { %393 = vmatpush.msra.mxu2 %v300_v39  ;;  %451 = vmatpush.msrb.mxu0 %v450_v3  ;;  %v486_v14 = vsub.f32 %v484_v6, %v485_v10  ;;  %v493_v20 = vand.u32 4294901760, %v492_v18 }
  0x26   :  { %416 = vmatpush.msra.mxu3 %v255_v27  ;;  %482 = vmatpush.msrb.mxu1 %v481_v13 }
  0x27   :  { %453 = vmatpush.msrb.mxu0 %v452_v7  ;;  %v487_v17 = vand.u32 4294901760, %v486_v14 }
  0x28   :  { %418 = vmatpush.msra.mxu3 %v257_v32 }
  0x29   :  { %455 = vmatpush.msrb.mxu0 %v454_v12  ;;  %488 = vmatpush.msrb.mxu1 %v487_v17 }
  0x2b   :  { %494 = vmatpush.msrb.mxu1 %v493_v20 }
  0x2d   :  { %500 = vmatpush.msrb.mxu1 %v499_v22 }
  0x95   :  { %v91_v44 = vpop.f32.mrf.mxu0 }
  0x96   :  { %v92_v45 = vadd.f32 %v633_v43, %v91_v44  ;;  %v122_v46 = vpop.f32.mrf.mxu1  ;;  %v148_v47 = vpop.f32.mrf.mxu2  ;;  %v635_v43 = vld [vmem:[%s786_s6] ss:$0 sm:$0xff] }
  0x97   :  { %v173_v49 = vpop.f32.mrf.mxu3 }
  0x98   :  { %v123_v48 = vadd.f32 %v122_v46, %v92_v45 }
  0x9a   :  { %v149_v50 = vadd.f32 %v148_v47, %v123_v48 }
  0x9c   :  { %v174_v51 = vadd.f32 %v173_v49, %v149_v50 }
  0x9d   :  { %v200_v52 = vpop.f32.mrf.mxu0 }
  0x9e   :  { %v201_v53 = vadd.f32 %v200_v52, %v174_v51  ;;  %v223_v54 = vpop.f32.mrf.mxu1 }
  0xa0   :  { %v224_v55 = vadd.f32 %v223_v54, %v201_v53 }
  0xa2   :  { %636 = vtanh.f32 %v224_v55 }
  0xa8   :  { %v637_v56 = vpop.eup %636 }
  0xa9   :  { %v237_v57 = vsel %vm235_vm1, %v637_v56, 0 }
  0xaa   :  { %v259_v58 = vand.u32 4294901760, %v237_v57 }
  0xac   :  { %305 = vmatmul.f32.vlgmr.msrb.gmra.mxu3 %v259_v58  ;;  %v260_v59 = vsub.f32 %v237_v57, %v259_v58 }
  0xad   :  { %549 = vmatpush.msrb.mxu3 %v448_v0 }
  0xae   :  { %335 = vmatmul.f32.vlgmr.msra.gmra.mxu0 %v260_v59  ;;  %v261_v60 = vand.u32 4294901760, %v260_v59 }
  0xaf   :  { %551 = vmatpush.msrb.mxu3 %v450_v3  ;;  %578 = vmatpush.msra.mxu0 %v479_v5 }
  0xb0   :  { %362 = vmatmul.f32.vlgmr.msra.gmra.mxu1 %v261_v60  ;;  %v262_v61 = vsub.f32 %v260_v59, %v261_v60 }
  0xb1   :  { %553 = vmatpush.msrb.mxu3 %v452_v7  ;;  %582 = vmatpush.msra.mxu0 %v485_v10 }
  0xb2   :  { %v263_v62 = vand.u32 4294901760, %v262_v61  ;;  %609 = vmatpush.msra.mxu1 %v448_v0 }
  0xb3   :  { %555 = vmatpush.msrb.mxu3 %v454_v12  ;;  %586 = vmatpush.msra.mxu0 %v491_v15 }
  0xb4   :  { %264 = vmatmul.f32.vlgmr.msrb.gmra.mxu2 %v263_v62  ;;  %420 = vmatmul.f32.vlgmr.msra.gmra.mxu3 %v259_v58 }
  0xb5   :  { %520 = vmatpush.msrb.mxu2 %v478_v2  ;;  %590 = vmatpush.msra.mxu0 %v497_v19 }
  0xb6   :  { %611 = vmatpush.msra.mxu1 %v450_v3 }
  0xb7   :  { %523 = vmatpush.msrb.mxu2 %v484_v6 }
  0xb8   :  { %613 = vmatpush.msra.mxu1 %v452_v7 }
  0xb9   :  { %526 = vmatpush.msrb.mxu2 %v490_v11 }
  0xba   :  { %615 = vmatpush.msra.mxu1 %v454_v12 }
  0xbb   :  { %529 = vmatpush.msrb.mxu2 %v496_v16 }
  0xbc   :  { %395 = vmatmul.f32.vlgmr.msra.gmra.mxu2 %v259_v58 }
 0x12b   :  { %v336_v28 = vpop.f32.mrf.mxu0 }
 0x12d   :  { %v363_v30 = vpop.f32.mrf.mxu1 }
 0x12f   :  { %v306_v24 = vpop.f32.mrf.mxu3 }
 0x137   :  { %v265_v25 = vpop.f32.mrf.mxu2  ;;  %v421_v34 = vpop.f32.mrf.mxu3 }
 0x138   :  { %v266_v26 = vadd.f32 %v634_v23, %v265_v25 }
 0x13a   :  { %v307_v27 = vadd.f32 %v306_v24, %v266_v26 }
 0x13c   :  { %v337_v29 = vadd.f32 %v336_v28, %v307_v27 }
 0x13e   :  { %v364_v31 = vadd.f32 %v363_v30, %v337_v29 }
 0x13f   :  { %v396_v32 = vpop.f32.mrf.mxu2 }
 0x140   :  { %v397_v33 = vadd.f32 %v396_v32, %v364_v31 }
 0x142   :  { %v422_v35 = vadd.f32 %v421_v34, %v397_v33 }
 0x144   :  { %638 = vtanh.f32 %v422_v35 }
 0x14a   :  { %v639_v36 = vpop.eup %638 }
 0x14b   :  { %v434_v37 = vsel %vm235_vm1, %v639_v36, 0 }
 0x14c   :  { %v456_v38 = vand.u32 4294901760, %v434_v37 }
 0x14e   :  { %502 = vmatmul.f32.vlgmr.msrb.gmra.mxu1 %v456_v38  ;;  %v457_v39 = vsub.f32 %v434_v37, %v456_v38 }
 0x150   :  { %532 = vmatmul.f32.vlgmr.msrb.gmra.mxu2 %v457_v39  ;;  %v458_v40 = vand.u32 4294901760, %v457_v39 }
 0x152   :  { %559 = vmatmul.f32.vlgmr.msrb.gmra.mxu3 %v458_v40  ;;  %v459_v41 = vsub.f32 %v457_v39, %v458_v40 }
 0x154   :  { %v460_v42 = vand.u32 4294901760, %v459_v41 }
 0x156   :  { %461 = vmatmul.f32.vlgmr.msrb.gmra.mxu0 %v460_v42  ;;  %617 = vmatmul.f32.vlgmr.msra.gmra.mxu1 %v456_v38 }
 0x15e   :  { %592 = vmatmul.f32.vlgmr.msra.gmra.mxu0 %v456_v38 }
 0x1cb   :  { %v503_v44 = vpop.f32.mrf.mxu1 }
 0x1d3   :  { %v462_v45 = vpop.f32.mrf.mxu0  ;;  %v533_v48 = vpop.f32.mrf.mxu2 }
 0x1d4   :  { %v463_v46 = vadd.f32 %v635_v43, %v462_v45  ;;  %v618_v54 = vpop.f32.mrf.mxu1 }
 0x1d5   :  { %v560_v50 = vpop.f32.mrf.mxu3 }
 0x1d6   :  { %v504_v47 = vadd.f32 %v503_v44, %v463_v46 }
 0x1d8   :  { %v534_v49 = vadd.f32 %v533_v48, %v504_v47 }
 0x1da   :  { %v561_v51 = vadd.f32 %v560_v50, %v534_v49 }
 0x1db   :  { %v593_v52 = vpop.f32.mrf.mxu0 }
 0x1dc   :  { %v594_v53 = vadd.f32 %v593_v52, %v561_v51 }
 0x1de   :  { %v619_v55 = vadd.f32 %v618_v54, %v594_v53 }
 0x1e0   :  { %622 = vst.msk [vmem:[%s787_s7] sm:$0xff] %vm621_vm2, %v619_v55 }
 0x1e1   :  { %627 = vsyncpa [#allocation3], 1 }
 0x1e2   :  { %628 = vsyncpa [#allocation5], 1 }

</bundles_post_ra>
